<compile_context>
chip_gen: v5e
topology: v5e:2x2
jax: 0.10.0
libtpu: 0.0.40
codegen_flags: <defaults>
</compile_context>

<pallas_src>
import functools

import jax
import jax.numpy as jnp
from jax.experimental import pallas as pl
from jax.experimental.pallas import tpu as pltpu


F_PAD = 128  # lane-dense padding target for all feature / class dimensions


# ---------------------------------------------------------------------------
# Fused Pallas kernel: the whole GCN forward pass in one invocation.
#   inputs : a_ref  [N, N]           f32  normalized adjacency (VMEM resident)
#            x_ref  [N, F_PAD]       f32  node features, zero-padded lanes
#            w_ref  [L, F_PAD, F_PAD]bf16 stacked, zero-padded layer weights
#            b_ref  [L, 1, F_PAD]    f32  stacked, zero-padded biases
#   output : o_ref  [N, F_PAD]       f32  log_softmax logits (real classes in
#                                         lanes [0, num_classes))
# ---------------------------------------------------------------------------
def _fused_gcn_kernel(a_ref, x_ref, w_ref, b_ref, o_ref, *, num_layers,
                      num_classes):
    a = a_ref[...]            # [N, N] f32 — loaded once, reused for every layer
    h = x_ref[...]            # [N, F_PAD] f32 running activation (never leaves VMEM)

    neg_large = jnp.finfo(jnp.float32).min / 2

    for layer in range(num_layers):          # unrolled at trace time (L is small)
        w = w_ref[layer]                     # [F_PAD, F_PAD] bf16
        b = b_ref[layer]                     # [1, F_PAD]     f32

        # X @ W on the MXU: bf16 x bf16 inputs, f32 accumulation.
        xw = jnp.dot(h.astype(jnp.bfloat16), w,
                     preferred_element_type=jnp.float32)
        # A_hat @ (XW) on the MXU, fully f32: K = N is tiny here, bf16 would
        # buy no MXU passes and only lose precision.
        z = jnp.dot(a, xw, preferred_element_type=jnp.float32) + b

        if layer < num_layers - 1:
            # ReLU keeps the zero-padded lanes exactly 0 for the next layer.
            h = jnp.maximum(z, 0.0)
            # TODO(synk): F.dropout(x, training=self.training) — identity in
            # eval mode (training=False), so no stochastic masking here.
        else:
            # Mask padded class lanes before the row-wise log_softmax.
            lane = jax.lax.broadcasted_iota(jnp.int32, z.shape, 1)
            z = jnp.where(lane < num_classes, z, neg_large)
            m = jnp.max(z, axis=-1, keepdims=True)
            zs = z - m
            h = zs - jnp.log(jnp.sum(jnp.exp(zs), axis=-1, keepdims=True))

    o_ref[...] = h.astype(o_ref.dtype)


def gcn_forward(a_hat, x_pad, ws_bf16, bs, num_classes):
    """Fused GCN forward: one grid-less pallas_call, all operands VMEM-resident."""
    n = a_hat.shape[0]
    num_layers = ws_bf16.shape[0]
    kernel = functools.partial(_fused_gcn_kernel, num_layers=num_layers,
                               num_classes=num_classes)

    # Advisory cost estimate for the XLA scheduler.
    flops = num_layers * (2 * n * F_PAD * F_PAD + 2 * n * n * F_PAD)
    transcendentals = n * F_PAD + n  # exp + log of the final log_softmax
    bytes_accessed = (a_hat.size * 4 + x_pad.size * 4 + ws_bf16.size * 2
                      + bs.size * 4 + n * F_PAD * 4)

    out_pad = pl.pallas_call(
        kernel,
        out_shape=jax.ShapeDtypeStruct((n, F_PAD), jnp.float32),
        in_specs=[pl.BlockSpec(memory_space=pltpu.MemorySpace.VMEM)] * 4,
        out_specs=pl.BlockSpec(memory_space=pltpu.MemorySpace.VMEM),
        compiler_params=pltpu.CompilerParams(vmem_limit_bytes=16 << 20),
        cost_estimate=pl.CostEstimate(flops=flops,
                                      transcendentals=transcendentals,
                                      bytes_accessed=bytes_accessed),
    )(a_hat.astype(jnp.float32), x_pad, ws_bf16, bs)
    # Strip the lane padding; real class logits live in the first lanes.
    return out_pad[:, :num_classes]


# ---------------------------------------------------------------------------
# Glue (plain JAX): GCN symmetric normalization of the adjacency.
# Uses .at[src, dst].set(1.0) + I, which matches PyG gcn_norm for graphs
# without duplicate edges or pre-existing self-loops (asserted below).
# ---------------------------------------------------------------------------
def normalized_adjacency(edge_index, num_nodes):
    src, dst = edge_index[0], edge_index[1]
    # Guard the simple construction: duplicate edges / pre-existing self-loops
    # would require scatter-add + PyG self-loop handling to match gcn_norm.
    flat = src.astype(jnp.int32) * num_nodes + dst.astype(jnp.int32)
    assert int(jnp.unique(flat).shape[0]) == int(flat.shape[0]), "duplicate edges"
    assert not bool(jnp.any(src == dst)), "pre-existing self-loops"

    a = jnp.zeros((num_nodes, num_nodes), dtype=jnp.float32)
    a = a.at[src, dst].set(1.0)
    a = a + jnp.eye(num_nodes, dtype=jnp.float32)  # self-loops
    deg = jnp.sum(a, axis=1)
    d_inv_sqrt = 1.0 / jnp.sqrt(deg)
    return a * d_inv_sqrt[:, None] * d_inv_sqrt[None, :]


# ---------------------------------------------------------------------------
# Parameter init (glorot-ish weights, zero bias like GCNConv) + lane padding.
# ---------------------------------------------------------------------------
def init_params(key, dims):
    params = []
    for f_in, f_out in zip(dims[:-1], dims[1:]):
        key, wk = jax.random.split(key)
        scale = jnp.sqrt(6.0 / (f_in + f_out))
        w = jax.random.uniform(wk, (f_in, f_out), jnp.float32, -scale, scale)
        b = jnp.zeros((f_out,), jnp.float32)
        params.append((w, b))
    return params


def pad_params(params, f_pad=F_PAD):
    """Stack layers, zero-pad every feature dim, pre-cast weights to bf16."""
    num_layers = len(params)
    ws = jnp.zeros((num_layers, f_pad, f_pad), jnp.float32)
    bs = jnp.zeros((num_layers, 1, f_pad), jnp.float32)
    for l, (w, b) in enumerate(params):
        f_in, f_out = w.shape
        ws = ws.at[l, :f_in, :f_out].set(w)
        bs = bs.at[l, 0, :f_out].set(b)
    # bf16 weights: halves the largest DMA / VMEM footprint, bf16-native MXU.
    return ws.astype(jnp.bfloat16), bs


def pad_features(x, f_pad=F_PAD):
    n, f = x.shape
    return jnp.pad(x, ((0, 0), (0, f_pad - f)))


# ---------------------------------------------------------------------------
# Pure-JAX f32 reference (for tolerance check against the bf16-W kernel).
# ---------------------------------------------------------------------------
def gcn_forward_ref(a_hat, x, params):
    h = x
    for (w, b) in params[:-1]:
        h = jnp.maximum(a_hat @ (h @ w) + b, 0.0)
    w, b = params[-1]
    z = a_hat @ (h @ w) + b
    return jax.nn.log_softmax(z, axis=1)


if __name__ == "__main__":
    # Small, forward-consistent shapes:
    #   num_nodes=32, num_features=16, gcn_out_channels=32, num_classes=8,
    #   number_layers=3  -> GCNConv dims: 16->32, 32->32, 32->8
    N, F_IN, HIDDEN, N_CLASSES, N_LAYERS = 32, 16, 32, 8, 3

    key = jax.random.PRNGKey(0)
    key, xk = jax.random.split(key)
    x = jax.random.normal(xk, (N, F_IN), dtype=jnp.float32)

    # Deterministic symmetric graph: a ring over the N nodes (both directions).
    fwd_src = jnp.arange(N, dtype=jnp.int32)
    fwd_dst = (fwd_src + 1) % N
    edge_index = jnp.stack(
        [jnp.concatenate([fwd_src, fwd_dst]), jnp.concatenate([fwd_dst, fwd_src])]
    )  # [2, 2N]

    a_hat = normalized_adjacency(edge_index, N)

    dims = [F_IN] + [HIDDEN] * (N_LAYERS - 1) + [N_CLASSES]
    params = init_params(key, dims)
    ws_bf16, bs = pad_params(params)
    x_pad = pad_features(x)

    out = gcn_forward(a_hat, x_pad, ws_bf16, bs, N_CLASSES)
    out = jax.block_until_ready(out)

    ref = gcn_forward_ref(a_hat, x, params)

    assert out.shape == (N, N_CLASSES)
    # log_softmax rows should exponentiate to ~1 (padding must not perturb it)
    assert bool(jnp.all(jnp.abs(jnp.sum(jnp.exp(out), axis=1) - 1.0) < 1e-4))
    # matches the full-f32 reference within bf16-weight tolerance (tightened:
    # the aggregation matmul is now full f32, only W/h of X@W are bf16)
    assert bool(jnp.max(jnp.abs(out - ref)) < 0.05)
    print("KERNEL_OK")
</pallas_src>

<mosaic_0001>
module attributes {stable_mosaic.version = 11 : i64} {
  func.func @_fused_gcn_kernel(%arg0: memref<32x32xf32, #tpu.memory_space<vmem>>, %arg1: memref<32x128xf32, #tpu.memory_space<vmem>>, %arg2: memref<3x128x128xbf16, #tpu.memory_space<vmem>>, %arg3: memref<3x1x128xf32, #tpu.memory_space<vmem>>, %arg4: memref<32x128xf32, #tpu.memory_space<vmem>>) attributes {dimension_semantics = [], scalar_prefetch = 0 : i64, scratch_operands = 0 : i64, tpu.core_type = #tpu.core_type<tc>} {
    %c0 = arith.constant 0 : index
    %c0_0 = arith.constant 0 : index
    %0 = vector.load %arg0[%c0, %c0_0] : memref<32x32xf32, #tpu.memory_space<vmem>>, vector<32x32xf32>
    %c0_1 = arith.constant 0 : index
    %c0_2 = arith.constant 0 : index
    %1 = vector.load %arg1[%c0_1, %c0_2] : memref<32x128xf32, #tpu.memory_space<vmem>>, vector<32x128xf32>
    %c0_3 = arith.constant 0 : index
    %c0_4 = arith.constant 0 : index
    %c0_5 = arith.constant 0 : index
    %2 = vector.load %arg2[%c0_3, %c0_4, %c0_5] : memref<3x128x128xbf16, #tpu.memory_space<vmem>>, vector<1x128x128xbf16>
    %3 = vector.shape_cast %2 : vector<1x128x128xbf16> to vector<128x128xbf16>
    %c0_6 = arith.constant 0 : index
    %c0_7 = arith.constant 0 : index
    %c0_8 = arith.constant 0 : index
    %4 = vector.load %arg3[%c0_6, %c0_7, %c0_8] : memref<3x1x128xf32, #tpu.memory_space<vmem>>, vector<1x1x128xf32>
    %5 = vector.shape_cast %4 : vector<1x1x128xf32> to vector<1x128xf32>
    %6 = arith.truncf %1 : vector<32x128xf32> to vector<32x128xbf16>
    %cst = arith.constant dense<0.000000e+00> : vector<32x128xf32>
    %7 = tpu.matmul %6, %3, %cst {dimension_numbers = #tpu.dot_dimension_numbers<[1], [0], [0], [1], [0, 0, 1, 1], [], []>} : vector<32x128xbf16>, vector<128x128xbf16>, vector<32x128xf32> -> vector<32x128xf32>
    %cst_9 = arith.constant dense<0.000000e+00> : vector<32x128xf32>
    %8 = tpu.matmul %0, %7, %cst_9 {dimension_numbers = #tpu.dot_dimension_numbers<[1], [0], [0], [1], [0, 0, 1, 1], [], []>} : vector<32x32xf32>, vector<32x128xf32>, vector<32x128xf32> -> vector<32x128xf32>
    %9 = vector.broadcast %5 : vector<1x128xf32> to vector<32x128xf32>
    %10 = arith.addf %8, %9 : vector<32x128xf32>
    %cst_10 = arith.constant 0.000000e+00 : f32
    %11 = vector.broadcast %cst_10 : f32 to vector<32x128xf32>
    %12 = arith.maximumf %10, %11 : vector<32x128xf32>
    %c1 = arith.constant 1 : index
    %c0_11 = arith.constant 0 : index
    %c0_12 = arith.constant 0 : index
    %13 = vector.load %arg2[%c1, %c0_11, %c0_12] : memref<3x128x128xbf16, #tpu.memory_space<vmem>>, vector<1x128x128xbf16>
    %14 = vector.shape_cast %13 : vector<1x128x128xbf16> to vector<128x128xbf16>
    %c1_13 = arith.constant 1 : index
    %c0_14 = arith.constant 0 : index
    %c0_15 = arith.constant 0 : index
    %15 = vector.load %arg3[%c1_13, %c0_14, %c0_15] : memref<3x1x128xf32, #tpu.memory_space<vmem>>, vector<1x1x128xf32>
    %16 = vector.shape_cast %15 : vector<1x1x128xf32> to vector<1x128xf32>
    %17 = arith.truncf %12 : vector<32x128xf32> to vector<32x128xbf16>
    %cst_16 = arith.constant dense<0.000000e+00> : vector<32x128xf32>
    %18 = tpu.matmul %17, %14, %cst_16 {dimension_numbers = #tpu.dot_dimension_numbers<[1], [0], [0], [1], [0, 0, 1, 1], [], []>} : vector<32x128xbf16>, vector<128x128xbf16>, vector<32x128xf32> -> vector<32x128xf32>
    %cst_17 = arith.constant dense<0.000000e+00> : vector<32x128xf32>
    %19 = tpu.matmul %0, %18, %cst_17 {dimension_numbers = #tpu.dot_dimension_numbers<[1], [0], [0], [1], [0, 0, 1, 1], [], []>} : vector<32x32xf32>, vector<32x128xf32>, vector<32x128xf32> -> vector<32x128xf32>
    %20 = vector.broadcast %16 : vector<1x128xf32> to vector<32x128xf32>
    %21 = arith.addf %19, %20 : vector<32x128xf32>
    %cst_18 = arith.constant 0.000000e+00 : f32
    %22 = vector.broadcast %cst_18 : f32 to vector<32x128xf32>
    %23 = arith.maximumf %21, %22 : vector<32x128xf32>
    %c2 = arith.constant 2 : index
    %c0_19 = arith.constant 0 : index
    %c0_20 = arith.constant 0 : index
    %24 = vector.load %arg2[%c2, %c0_19, %c0_20] : memref<3x128x128xbf16, #tpu.memory_space<vmem>>, vector<1x128x128xbf16>
    %25 = vector.shape_cast %24 : vector<1x128x128xbf16> to vector<128x128xbf16>
    %c2_21 = arith.constant 2 : index
    %c0_22 = arith.constant 0 : index
    %c0_23 = arith.constant 0 : index
    %26 = vector.load %arg3[%c2_21, %c0_22, %c0_23] : memref<3x1x128xf32, #tpu.memory_space<vmem>>, vector<1x1x128xf32>
    %27 = vector.shape_cast %26 : vector<1x1x128xf32> to vector<1x128xf32>
    %28 = arith.truncf %23 : vector<32x128xf32> to vector<32x128xbf16>
    %cst_24 = arith.constant dense<0.000000e+00> : vector<32x128xf32>
    %29 = tpu.matmul %28, %25, %cst_24 {dimension_numbers = #tpu.dot_dimension_numbers<[1], [0], [0], [1], [0, 0, 1, 1], [], []>} : vector<32x128xbf16>, vector<128x128xbf16>, vector<32x128xf32> -> vector<32x128xf32>
    %cst_25 = arith.constant dense<0.000000e+00> : vector<32x128xf32>
    %30 = tpu.matmul %0, %29, %cst_25 {dimension_numbers = #tpu.dot_dimension_numbers<[1], [0], [0], [1], [0, 0, 1, 1], [], []>} : vector<32x32xf32>, vector<32x128xf32>, vector<32x128xf32> -> vector<32x128xf32>
    %31 = vector.broadcast %27 : vector<1x128xf32> to vector<32x128xf32>
    %32 = arith.addf %30, %31 : vector<32x128xf32>
    %33 = tpu.iota {dimensions = array<i32: 1>} : vector<32x128xi32>
    %c8_i32 = arith.constant 8 : i32
    %34 = vector.broadcast %c8_i32 : i32 to vector<32x128xi32>
    %35 = arith.cmpi slt, %33, %34 : vector<32x128xi32>
    %cst_26 = arith.constant -1.70141173E+38 : f32
    %36 = vector.broadcast %cst_26 : f32 to vector<32x128xf32>
    %37 = arith.select %35, %32, %36 : vector<32x128xi1>, vector<32x128xf32>
    %cst_27 = arith.constant dense<0xFF800000> : vector<32xf32>
    %38 = vector.multi_reduction <maximumf>, %37, %cst_27 [1] : vector<32x128xf32> to vector<32xf32>
    %39 = vector.shape_cast %38 : vector<32xf32> to vector<32x1xf32>
    %40 = vector.broadcast %39 : vector<32x1xf32> to vector<32x128xf32>
    %41 = arith.subf %37, %40 : vector<32x128xf32>
    %42 = math.exp %41 : vector<32x128xf32>
    %cst_28 = arith.constant dense<0.000000e+00> : vector<32xf32>
    %43 = vector.multi_reduction <add>, %42, %cst_28 [1] : vector<32x128xf32> to vector<32xf32>
    %44 = vector.shape_cast %43 : vector<32xf32> to vector<32x1xf32>
    %45 = math.log %44 : vector<32x1xf32>
    %46 = vector.broadcast %45 : vector<32x1xf32> to vector<32x128xf32>
    %47 = arith.subf %41, %46 : vector<32x128xf32>
    %c0_29 = arith.constant 0 : index
    %c0_30 = arith.constant 0 : index
    %48 = vector.load %arg4[%c0_29, %c0_30] : memref<32x128xf32, #tpu.memory_space<vmem>>, vector<32x128xf32>
    tpu.vector_store %arg4[%c0_29, %c0_30], %47 {strides = array<i32>} : memref<32x128xf32, #tpu.memory_space<vmem>>, vector<32x128xf32>,
    return
  }
}

</mosaic_0001>

<bundles_post_ra>
// kernel: tpu_custom_call.1
= control target key start
LH: loop header
LB: loop body
LE: loop exit
PB: predicated region body
PF: predicated region fallthrough
CT: control target
= control target key end

     0   :  { %9 = vsyncpa [#allocation3], 0  ;;  %s922_s0 = inlined_call_operand.hbm [shape: f32[32,32], index: 0, kind: input, shape index: {}]   ;;  %s923_s1 = inlined_call_operand.hbm [shape: f32[32,128], index: 1, kind: input, shape index: {}]   ;;  %s924_s2 = inlined_call_operand.hbm [shape: bf16[3,128,128], index: 2, kind: input, shape index: {}]   ;;  %s925_s3 = inlined_call_operand.hbm [shape: f32[3,1,128], index: 3, kind: input, shape index: {}]   ;;  %s926_s4 = inlined_call_operand.hbm [shape: f32[32,128], index: 4, kind: output, shape index: {}]  }
   0x1   :  { %10 = vsyncpa [#allocation6], 0 }
   0x2   :  { %11 = vsyncpa [#allocation9], 0 }
   0x3   :  { %12 = vsyncpa [#allocation4], 0  ;;  %s30_s17 = sshll.u32 %s923_s1, 4  ;;  %s830_s18 = smov [#allocation5]   ;;  %s31_s17 = int_to_ptr.hbm [resolvable:$true] %s30_s17 }
   0x4   :  { %s32_s19 = sshll.u32 %s830_s18, 4  ;;  %s17_s22 = sshll.u32 %s922_s0, 4  ;;  %s33_s19 = int_to_ptr.vmem [resolvable:$true] %s32_s19  ;;  %s18_s22 = int_to_ptr.hbm [resolvable:$true] %s17_s22 }
   0x5   :  { %s831_s23 = smov 128   ;;  %s832_s24 = smov 8  }
   0x6   :  { %38 = dma.hbm_to_vmem [thread:$0]  %s31_s17, 512, %s33_s19, [#allocation6], %s831_s23, %s831_s23, %s832_s24  }
   0x7   :  { %s833_s25 = smov [#allocation2]   ;;  %s43_s1 = sshll.u32 %s924_s2, 4  ;;  %s44_s1 = int_to_ptr.hbm [resolvable:$true] %s43_s1 }
   0x8   :  { %s19_s26 = sshll.u32 %s833_s25, 4  ;;  %s834_s0 = smov [#allocation7]   ;;  %s20_s26 = int_to_ptr.vmem [resolvable:$true] %s19_s26 }
   0x9   :  { %25 = dma.hbm_to_vmem [thread:$0]  %s18_s22, 512, %s20_s26, [#allocation3], %s831_s23, %s831_s23, %s832_s24  }
   0xa   :  { %s45_s29 = sshll.u32 %s834_s0, 4  ;;  %s56_s6 = sshll.u32 %s925_s3, 4  ;;  %s46_s29 = int_to_ptr.vmem [resolvable:$true] %s45_s29  ;;  %s57_s6 = int_to_ptr.hbm [resolvable:$true] %s56_s6 }
   0xb   :  { %s835_s7 = smov 64   ;;  %s836_s8 = smov 4  }
   0xc   :  { %51 = dma.hbm_to_vmem [thread:$0]  %s44_s1, 3072, %s46_s29, [#allocation6], %s835_s7, %s835_s7, %s836_s8  }
   0xd   :  { %s837_s9 = smov [#allocation8]   ;;  %s838_s2 = smov 16  }
   0xe   :  { %s58_s10 = sshll.u32 %s837_s9, 4  ;;  %s839_s11 = smov 1   ;;  %s59_s10 = int_to_ptr.vmem [resolvable:$true] %s58_s10 }
   0xf   :  { %64 = dma.hbm_to_vmem [thread:$0]  %s57_s6, 48, %s59_s10, [#allocation9], %s838_s2, %s838_s2, %s839_s11  }
  0x10   :  { %822 = dma.done.wait [#allocation3], 512  }
  0x11   :  { %823 = vsyncadd [#allocation3], 4294966784 }
  0x12   :  { %824 = dma.done.wait [#allocation6], 3584  }
  0x13   :  { %825 = vsyncadd [#allocation6], 4294963712 }
  0x14   :  { %826 = dma.done.wait [#allocation9], 48  }
  0x15   :  { %827 = vsyncadd [#allocation9], 4294967248  ;;  %v655_v0 = vld [vmem:[#allocation7 + $0x38] sm:$0xff]  ;;  %v654_v1 = vld [vmem:[#allocation7 + $0x30] sm:$0xff]  ;;  %vm178_vm0 = vcmask 261120   ;;  %s840_s3 = smov [#allocation10]  }
  0x16   :  { %156 = vmatpush.bf16.msra.mxu0 %v655_v0  ;;  %v653_v2 = vld [vmem:[#allocation7 + $0x28] sm:$0xff]  ;;  %v652_v3 = vld [vmem:[#allocation7 + $0x20] sm:$0xff]  ;;  %v651_v4 = vld [vmem:[#allocation7 + $0x18] sm:$0xff]  ;;  %s523_s12 = sshll.u32 %s840_s3, 4  ;;  %s525_s15 = sshll.u32 %s926_s4, 4  ;;  %s524_s12 = int_to_ptr.vmem [resolvable:$true] %s523_s12  ;;  %s526_s15 = int_to_ptr.hbm [resolvable:$true] %s525_s15 }
  0x17   :  { %v650_v5 = vld [vmem:[#allocation7 + $0x10] sm:$0xff]  ;;  %v649_v6 = vld [vmem:[#allocation7 + $0x8] sm:$0xff]  ;;  %v648_v7 = vld [vmem:[#allocation7] sm:$0xff] }
  0x18   :  { %v85_v8 = vld [vmem:[#allocation5] sm:$0xff]  ;;  %v86_v9 = vld [vmem:[#allocation5 + $0x8] sm:$0xff]  ;;  %v87_v11 = vld [vmem:[#allocation5 + $0x10] sm:$0xff] }
  0x19   :  { %v106_v10 = vpack.c.bf16 %v86_v9, %v85_v8  ;;  %v88_v12 = vld [vmem:[#allocation5 + $0x18] sm:$0xff]  ;;  %v662_v19 = vld [vmem:[#allocation7 + $0x70] sm:$0xff]  ;;  %v884_v20 = vld [vmem:[#allocation2] sm:$0xff] }
  0x1a   :  { %157 = vmatpush.bf16.msra.mxu0 %v654_v1  ;;  %v107_v13 = vpack.c.bf16 %v88_v12, %v87_v11  ;;  %v663_v18 = vld [vmem:[#allocation7 + $0x78] sm:$0xff]  ;;  %v661_v21 = vld [vmem:[#allocation7 + $0x68] sm:$0xff]  ;;  %v660_v22 = vld [vmem:[#allocation7 + $0x60] sm:$0xff]  ;;  %v468_v12 = vlaneseq }
  0x1b   :  { %293 = vmatpush.bf16.msra.mxu2 %v663_v18  ;;  %v888_v23 = vld [vmem:[#allocation2 + $0x8] sm:$0xff]  ;;  %v892_v24 = vld [vmem:[#allocation2 + $0x10] sm:$0xff]  ;;  %v896_v25 = vld [vmem:[#allocation2 + $0x18] sm:$0xff] }
  0x1c   :  { %v659_v26 = vld [vmem:[#allocation7 + $0x58] sm:$0xff]  ;;  %v658_v27 = vld [vmem:[#allocation7 + $0x50] sm:$0xff]  ;;  %v657_v28 = vld [vmem:[#allocation7 + $0x48] sm:$0xff] }
  0x1d   :  { %v656_v29 = vld [vmem:[#allocation7 + $0x40] sm:$0xff]  ;;  %v671_v49 = vld [vmem:[#allocation7 + $0xb8] sm:$0xff]  ;;  %v670_v50 = vld [vmem:[#allocation7 + $0xb0] sm:$0xff] }
  0x1e   :  { %158 = vmatpush.bf16.msra.mxu0 %v653_v2  ;;  %v683_v31 = vld [vmem:[#allocation8] ss:$0 sm:$0xff]  ;;  %v669_v51 = vld [vmem:[#allocation7 + $0xa8] sm:$0xff]  ;;  %v667_v53 = vld [vmem:[#allocation7 + $0x98] sm:$0xff] }
  0x1f   :  { %294 = vmatpush.bf16.msra.mxu2 %v662_v19  ;;  %v668_v52 = vld [vmem:[#allocation7 + $0xa0] sm:$0xff]  ;;  %v666_v54 = vld [vmem:[#allocation7 + $0x90] sm:$0xff]  ;;  %v665_v55 = vld [vmem:[#allocation7 + $0x88] sm:$0xff] }
  0x20   :  { %v664_v56 = vld [vmem:[#allocation7 + $0x80] sm:$0xff] }
  0x21   :  { %v684_v58 = vld [vmem:[#allocation8 + $0x1] ss:$0 sm:$0xff] }
  0x22   :  { %159 = vmatpush.bf16.msra.mxu0 %v652_v3 }
  0x23   :  { %295 = vmatpush.bf16.msra.mxu2 %v661_v21 }
  0x26   :  { %160 = vmatpush.bf16.msra.mxu0 %v651_v4 }
  0x27   :  { %296 = vmatpush.bf16.msra.mxu2 %v660_v22 }
  0x2a   :  { %161 = vmatpush.bf16.msra.mxu0 %v650_v5 }
  0x2b   :  { %297 = vmatpush.bf16.msra.mxu2 %v659_v26 }
  0x2e   :  { %162 = vmatpush.bf16.msra.mxu0 %v649_v6 }
  0x2f   :  { %298 = vmatpush.bf16.msra.mxu2 %v658_v27 }
  0x32   :  { %163 = vmatpush.bf16.msra.mxu0 %v648_v7 }
  0x33   :  { %299 = vmatpush.bf16.msra.mxu2 %v657_v28 }
  0x35   :  { %164 = vmatmul.bf16.vlgmr.msra.gmra.mxu0 %v106_v10 }
  0x37   :  { %300 = vmatpush.bf16.msra.mxu2 %v656_v29 }
  0x45   :  { %169 = vmatmul.bf16.gmra.mxu0 %v107_v13  ;;  %v469_v13 = vand.u32 127, %v468_v12 }
  0x47   :  { %vm470_vm1 = vcmp.lt.s32.totalorder %v469_v13, 8 }
  0xb2   :  { %v165_v14 = vpop.f32.mrf.mxu0 }
  0xba   :  { %v167_v15 = vpop.f32.mrf.mxu0 }
  0xc2   :  { %v170_v16 = vpop.f32.mrf.mxu0 }
  0xca   :  { %v172_v17 = vpop.f32.mrf.mxu0 }
  0xcb   :  { %203 = vmatpush.msra.mxu1 %v172_v17 }
  0xcd   :  { %204 = vmatpush.msra.mxu1 %v170_v16 }
  0xcf   :  { %205 = vmatpush.msra.mxu1 %v167_v15 }
  0xd1   :  { %206 = vmatpush.msra.mxu1 %v165_v14  ;;  %v685_v14 = vld [vmem:[#allocation8 + $0x2] ss:$0 sm:$0xff] }
  0xd2   :  { %572 = vmatmul.msk.f32.vlgmr.msra.gmra.mxu1 %vm178_vm0, %v884_v20 }
  0xd3   :  { %417 = vmatpush.bf16.msrb.mxu1 %v671_v49 }
  0xd7   :  { %418 = vmatpush.bf16.msrb.mxu1 %v670_v50 }
  0xda   :  { %573 = vmatmul.msk.f32.gmra.mxu1 %vm178_vm0, %v888_v23 }
  0xdb   :  { %419 = vmatpush.bf16.msrb.mxu1 %v669_v51 }
  0xdf   :  { %420 = vmatpush.bf16.msrb.mxu1 %v668_v52 }
  0xe2   :  { %574 = vmatmul.msk.f32.gmra.mxu1 %vm178_vm0, %v892_v24 }
  0xe3   :  { %421 = vmatpush.bf16.msrb.mxu1 %v667_v53 }
  0xe7   :  { %422 = vmatpush.bf16.msrb.mxu1 %v666_v54 }
  0xea   :  { %575 = vmatmul.msk.f32.gmra.mxu1 %vm178_vm0, %v896_v25 }
  0xeb   :  { %423 = vmatpush.bf16.msrb.mxu1 %v665_v55 }
  0xef   :  { %424 = vmatpush.bf16.msrb.mxu1 %v664_v56 }
 0x14f   :  { %v208_v30 = vpop.f32.mrf.mxu1 }
 0x150   :  { %v209_v32 = vadd.f32 %v683_v31, %v208_v30 }
 0x152   :  { %v220_v35 = vmax.f32 %v209_v32, 0.0 }
 0x157   :  { %v211_v33 = vpop.f32.mrf.mxu1 }
 0x158   :  { %v212_v34 = vadd.f32 %v683_v31, %v211_v33 }
 0x15a   :  { %v221_v36 = vmax.f32 %v212_v34, 0.0 }
 0x15c   :  { %v243_v37 = vpack.c.bf16 %v221_v36, %v220_v35 }
 0x15e   :  { %301 = vmatmul.bf16.vlgmr.msra.gmra.mxu2 %v243_v37 }
 0x15f   :  { %v214_v38 = vpop.f32.mrf.mxu1 }
 0x160   :  { %v215_v39 = vadd.f32 %v683_v31, %v214_v38 }
 0x162   :  { %v222_v42 = vmax.f32 %v215_v39, 0.0 }
 0x167   :  { %v217_v40 = vpop.f32.mrf.mxu1 }
 0x168   :  { %v218_v41 = vadd.f32 %v683_v31, %v217_v40 }
 0x16a   :  { %v223_v43 = vmax.f32 %v218_v41, 0.0 }
 0x16c   :  { %v244_v44 = vpack.c.bf16 %v223_v43, %v222_v42 }
 0x16e   :  { %306 = vmatmul.bf16.gmra.mxu2 %v244_v44 }
 0x1e1   :  { %v302_v45 = vpop.f32.mrf.mxu2 }
 0x1e9   :  { %v304_v46 = vpop.f32.mrf.mxu2 }
 0x1f1   :  { %v307_v47 = vpop.f32.mrf.mxu2 }
 0x1f9   :  { %v309_v48 = vpop.f32.mrf.mxu2 }
 0x1fa   :  { %327 = vmatpush.msra.mxu3 %v309_v48 }
 0x1fc   :  { %328 = vmatpush.msra.mxu3 %v307_v47 }
 0x1fe   :  { %329 = vmatpush.msra.mxu3 %v304_v46 }
 0x200   :  { %330 = vmatpush.msra.mxu3 %v302_v45 }
 0x201   :  { %608 = vmatmul.msk.f32.vlgmr.msra.gmra.mxu3 %vm178_vm0, %v884_v20 }
 0x209   :  { %609 = vmatmul.msk.f32.gmra.mxu3 %vm178_vm0, %v888_v23 }
 0x211   :  { %610 = vmatmul.msk.f32.gmra.mxu3 %vm178_vm0, %v892_v24 }
 0x219   :  { %611 = vmatmul.msk.f32.gmra.mxu3 %vm178_vm0, %v896_v25 }
 0x284   :  { %v332_v57 = vpop.f32.mrf.mxu3 }
 0x285   :  { %v333_v59 = vadd.f32 %v684_v58, %v332_v57 }
 0x287   :  { %v344_v62 = vmax.f32 %v333_v59, 0.0 }
 0x28c   :  { %v335_v60 = vpop.f32.mrf.mxu3 }
 0x28d   :  { %v336_v61 = vadd.f32 %v684_v58, %v335_v60 }
 0x28f   :  { %v345_v63 = vmax.f32 %v336_v61, 0.0 }
 0x291   :  { %v367_v0 = vpack.c.bf16 %v345_v63, %v344_v62 }
 0x293   :  { %425 = vmatmul.bf16.vlgmr.msrb.gmra.mxu1 %v367_v0 }
 0x294   :  { %v338_v1 = vpop.f32.mrf.mxu3 }
 0x295   :  { %v339_v2 = vadd.f32 %v684_v58, %v338_v1 }
 0x297   :  { %v346_v5 = vmax.f32 %v339_v2, 0.0 }
 0x29c   :  { %v341_v3 = vpop.f32.mrf.mxu3 }
 0x29d   :  { %v342_v4 = vadd.f32 %v684_v58, %v341_v3 }
 0x29f   :  { %v347_v6 = vmax.f32 %v342_v4, 0.0 }
 0x2a1   :  { %v368_v7 = vpack.c.bf16 %v347_v6, %v346_v5 }
 0x2a3   :  { %430 = vmatmul.bf16.gmra.mxu1 %v368_v7 }
 0x310   :  { %v426_v8 = vpop.f32.mrf.mxu1 }
 0x318   :  { %v428_v9 = vpop.f32.mrf.mxu1 }
 0x320   :  { %v431_v10 = vpop.f32.mrf.mxu1 }
 0x328   :  { %v433_v11 = vpop.f32.mrf.mxu1 }
 0x329   :  { %451 = vmatpush.msrb.mxu3 %v433_v11 }
 0x32b   :  { %452 = vmatpush.msrb.mxu3 %v431_v10 }
 0x32d   :  { %453 = vmatpush.msrb.mxu3 %v428_v9 }
 0x32f   :  { %454 = vmatpush.msrb.mxu3 %v426_v8 }
 0x330   :  { %644 = vmatmul.msk.f32.vlgmr.msrb.gmra.mxu3 %vm178_vm0, %v884_v20 }
 0x338   :  { %645 = vmatmul.msk.f32.gmra.mxu3 %vm178_vm0, %v888_v23 }
 0x340   :  { %646 = vmatmul.msk.f32.gmra.mxu3 %vm178_vm0, %v892_v24 }
 0x348   :  { %647 = vmatmul.msk.f32.gmra.mxu3 %vm178_vm0, %v896_v25 }
 0x3b3   :  { %v456_v15 = vpop.f32.mrf.mxu3 }
 0x3b4   :  { %v457_v16 = vadd.f32 %v685_v14, %v456_v15 }
 0x3b6   :  { %v471_v17 = vsel %vm470_vm1, %v457_v16, -1.7014117e+38 }
 0x3b7   :  { %475 = vmax.xlane.f32.xlu0 %v471_v17 }
 0x3bb   :  { %v459_v18 = vpop.f32.mrf.mxu3 }
 0x3bc   :  { %v460_v19 = vadd.f32 %v685_v14, %v459_v18 }
 0x3be   :  { %v472_v20 = vsel %vm470_vm1, %v460_v19, -1.7014117e+38 }
 0x3bf   :  { %477 = vmax.xlane.f32.xlu0 %v472_v20 }
 0x3c3   :  { %v462_v21 = vpop.f32.mrf.mxu3 }
 0x3c4   :  { %v463_v22 = vadd.f32 %v685_v14, %v462_v21 }
 0x3c6   :  { %v473_v23 = vsel %vm470_vm1, %v463_v22, -1.7014117e+38 }
 0x3c7   :  { %479 = vmax.xlane.f32.xlu1 %v473_v23 }
 0x3cb   :  { %v465_v24 = vpop.f32.mrf.mxu3 }
 0x3cc   :  { %v466_v26 = vadd.f32 %v685_v14, %v465_v24 }
 0x3ce   :  { %v474_v27 = vsel %vm470_vm1, %v466_v26, -1.7014117e+38 }
 0x3cf   :  { %481 = vmax.xlane.f32.xlu1 %v474_v27 }
 0x42a   :  { %v476_v25 = vpop.xlane.xlu0 %475 }
 0x42b   :  { %v483_v28 = vsub.f32 %v471_v17, %v476_v25 }
 0x42d   :  { %v487_v29 = vmul.f32 1.442695, %v483_v28 }
 0x42f   :  { %686 = vpow2.f32 %v487_v29 }
 0x432   :  { %v478_v30 = vpop.xlane.xlu0 %477 }
 0x433   :  { %v484_v31 = vsub.f32 %v472_v20, %v478_v30 }
 0x435   :  { %v687_v32 = vpop.eup %686  ;;  %v489_v33 = vmul.f32 1.442695, %v484_v31 }
 0x436   :  { %495 = vadd.xlane.f32.xlu2 %v687_v32 }
 0x437   :  { %688 = vpow2.f32 %v489_v33 }
 0x43a   :  { %v480_v34 = vpop.xlane.xlu1 %479 }
 0x43b   :  { %v485_v35 = vsub.f32 %v473_v23, %v480_v34 }
 0x43d   :  { %v689_v36 = vpop.eup %688  ;;  %v491_v37 = vmul.f32 1.442695, %v485_v35 }
 0x43e   :  { %497 = vadd.xlane.f32.xlu2 %v689_v36 }
 0x43f   :  { %690 = vpow2.f32 %v491_v37 }
 0x442   :  { %v482_v38 = vpop.xlane.xlu1 %481 }
 0x443   :  { %v486_v39 = vsub.f32 %v474_v27, %v482_v38 }
 0x445   :  { %v691_v40 = vpop.eup %690  ;;  %v493_v41 = vmul.f32 1.442695, %v486_v39 }
 0x446   :  { %499 = vadd.xlane.f32.xlu0 %v691_v40 }
 0x447   :  { %692 = vpow2.f32 %v493_v41 }
 0x44d   :  { %v693_v42 = vpop.eup %692 }
 0x44e   :  { %501 = vadd.xlane.f32.xlu1 %v693_v42 }
 0x4a9   :  { %v496_v43 = vpop.xlane.xlu2 %495 }
 0x4aa   :  { %694 = vlog2.f32 %v496_v43 }
 0x4b0   :  { %v695_v44 = vpop.eup %694 }
 0x4b1   :  { %v504_v45 = vmul.f32 0.6931472, %v695_v44  ;;  %v498_v46 = vpop.xlane.xlu2 %497 }
 0x4b2   :  { %696 = vlog2.f32 %v498_v46 }
 0x4b3   :  { %v511_v47 = vsub.f32 %v483_v28, %v504_v45 }
 0x4b5   :  { %515 = vst [vmem:[#allocation10] sm:$0xff] %v511_v47 }
 0x4b8   :  { %v697_v48 = vpop.eup %696 }
 0x4b9   :  { %v506_v49 = vmul.f32 0.6931472, %v697_v48  ;;  %v500_v50 = vpop.xlane.xlu0 %499 }
 0x4ba   :  { %698 = vlog2.f32 %v500_v50 }
 0x4bb   :  { %v512_v51 = vsub.f32 %v484_v31, %v506_v49 }
 0x4bd   :  { %516 = vst [vmem:[#allocation10 + $0x8] sm:$0xff] %v512_v51 }
 0x4c0   :  { %v699_v52 = vpop.eup %698 }
 0x4c1   :  { %v508_v53 = vmul.f32 0.6931472, %v699_v52  ;;  %v502_v54 = vpop.xlane.xlu1 %501 }
 0x4c2   :  { %700 = vlog2.f32 %v502_v54 }
 0x4c3   :  { %v513_v55 = vsub.f32 %v485_v35, %v508_v53 }
 0x4c5   :  { %517 = vst [vmem:[#allocation10 + $0x10] sm:$0xff] %v513_v55 }
 0x4c8   :  { %v701_v56 = vpop.eup %700 }
 0x4c9   :  { %v510_v57 = vmul.f32 0.6931472, %v701_v56 }
 0x4cb   :  { %v514_v58 = vsub.f32 %v486_v39, %v510_v57 }
 0x4cd   :  { %518 = vst [vmem:[#allocation10 + $0x18] sm:$0xff] %v514_v58 }
 0x4ce   :  { %531 = dma.vmem_to_hbm [thread:$0]  %s524_s12, 512, %s526_s15, [#allocation4], %s831_s23, %s831_s23, %s832_s24  }
 0x4cf   :  { %828 = dma.done.wait [#allocation4], 512  }
 0x4d0   :  { %829 = vsyncadd [#allocation4], 4294966784 }
 0x4d1   :  { %536 = vsyncpa [#allocation3], 1 }
 0x4d2   :  { %537 = vsyncpa [#allocation6], 1 }
 0x4d3   :  { %538 = vsyncpa [#allocation9], 1 }
 0x4d4   :  { %539 = vsyncpa [#allocation4], 1 }

</bundles_post_ra>
